<compile_context>
chip_gen: v7x
topology: tpu7x:2x2x1
jax: 0.10.0
libtpu: 0.0.40
codegen_flags: <defaults>
</compile_context>

<pallas_src>
import numpy as np
import jax
import jax.numpy as jnp
from jax.experimental import pallas as pl
from jax.experimental.pallas import tpu as pltpu


def _linear_der2_kernel(x_ref, o_ref):
    x = x_ref[...]
    zero = jnp.zeros((), dtype=x.dtype)
    # torch.clamp(x, 0, 0) == min(max(x, 0), 0); NaN propagates like torch.
    o_ref[...] = jnp.minimum(jnp.maximum(x, zero), zero)


def _cdiv(a, b):
    return -(-a // b)


def _round_up(v, m):
    return _cdiv(v, m) * m


def linear_der2(x, *, target_block_bytes=8 << 20, in_place=False, exact_nan=True):
    """Elementwise clamp(x, 0, 0) via a Pallas TPU kernel. Accepts any shape.

    in_place=True adds input_output_aliases={0: 0}; only useful if the caller
    donates x (otherwise XLA inserts a defensive copy).
    exact_nan=False skips the kernel and returns zeros (no HBM read) — valid
    whenever callers do not rely on NaN propagation.
    """
    orig_shape = x.shape
    dtype = x.dtype
    n = x.size
    if n == 0:
        return x
    if not exact_nan:
        # clamp(x, 0, 0) == 0 for every finite/infinite input; write-only path.
        return jnp.zeros(orig_shape, dtype=dtype)

    itemsize = jnp.dtype(dtype).itemsize
    # sublane granularity is dtype-aware: 8 rows (4B), 16 (2B), 32 (1B)
    sub = {4: 8, 2: 16, 1: 32}.get(itemsize, 8)

    # Widest lane-aligned last dim that divides n (fatter contiguous DMA rows).
    lane = 128
    for cand in (1024, 512, 256):
        if n % cand == 0:
            lane = cand
            break

    x_flat = x.reshape(-1)
    n_kernel = (n // lane) * lane          # lane-aligned prefix handled by the kernel
    tail_len = n - n_kernel                # <=127 elements, handled in plain jnp

    zero = jnp.zeros((), dtype=dtype)
    if n_kernel == 0:
        # Tiny (<128 elements): plain jnp elementwise, no kernel launch needed.
        out_flat = jnp.minimum(jnp.maximum(x_flat, zero), zero)
        return out_flat.reshape(orig_shape)

    rows = n_kernel // lane
    x2d = x_flat[:n_kernel].reshape(rows, lane)  # zero-copy in the common (aligned) case

    bytes_per_row = lane * itemsize
    # Row tile targeting ~target_block_bytes per block, multiple of the sublane unit.
    tr = max(sub, (target_block_bytes // bytes_per_row) // sub * sub)

    # Keep >= MIN_STEPS grid steps on large arrays so both v7x TensorCores and the
    # DMA pipeline (prefetch i+1 / writeback i-1) stay busy; only when each step
    # still moves a reasonable chunk (>= ~512 KiB).
    MIN_STEPS = 8
    min_rows_per_step = max(sub, ((512 << 10) // bytes_per_row) // sub * sub)
    if rows >= MIN_STEPS * min_rows_per_step:
        cap = max(min_rows_per_step, _round_up(_cdiv(rows, MIN_STEPS), sub))
        tr = min(tr, cap)

    if tr >= rows:
        tr = rows  # single block equal to the full array (always legal)
    grid = _cdiv(rows, tr)  # last block may be partial -> masked writes

    # Double-buffered in + out -> ~4x block footprint; leave headroom, stay under
    # v7x's 64 MiB per-TC VMEM (v5e/v6e have 128 MiB physical).
    block_bytes = tr * bytes_per_row
    vmem_limit = int(min(48 << 20, max(32 << 20, 4 * block_bytes + (8 << 20))))

    out2d = pl.pallas_call(
        _linear_der2_kernel,
        out_shape=jax.ShapeDtypeStruct((rows, lane), dtype),
        grid_spec=pltpu.PrefetchScalarGridSpec(
            num_scalar_prefetch=0,
            grid=(grid,),
            in_specs=[pl.BlockSpec((tr, lane), lambda i: (i, 0))],
            out_specs=pl.BlockSpec((tr, lane), lambda i: (i, 0)),
        ),
        compiler_params=pltpu.CompilerParams(
            dimension_semantics=("parallel",),
            vmem_limit_bytes=vmem_limit,
        ),
        input_output_aliases=({0: 0} if in_place else {}),
    )(x2d)

    out_flat = out2d.reshape(-1)
    if tail_len:
        tail = x_flat[n_kernel:]
        tail_out = jnp.minimum(jnp.maximum(tail, zero), zero)
        out_flat = jnp.concatenate([out_flat, tail_out])
    return out_flat.reshape(orig_shape)


if __name__ == "__main__":
    key = jax.random.PRNGKey(0)
    x = jax.random.normal(key, (2, 4, 16, 16), dtype=jnp.float32)

    y = linear_der2(x)
    y = jax.block_until_ready(y)

    # reference check (plain JAX, same semantics as torch.clamp(x, 0, 0))
    y_ref = jnp.minimum(jnp.maximum(x, 0.0), 0.0)
    assert y.shape == x.shape and y.dtype == x.dtype
    np.testing.assert_allclose(np.asarray(y), np.asarray(y_ref), rtol=0, atol=0)

    # also exercise a non-128-aligned size (prefix kernel + jnp tail path)
    x2 = jax.random.normal(jax.random.PRNGKey(1), (3, 5, 7), dtype=jnp.float32)
    y2 = jax.block_until_ready(linear_der2(x2))
    np.testing.assert_allclose(
        np.asarray(y2), np.asarray(jnp.minimum(jnp.maximum(x2, 0.0), 0.0)), rtol=0, atol=0
    )

    print("KERNEL_OK")
</pallas_src>

<mosaic_0001>
module attributes {stable_mosaic.version = 11 : i64} {
  func.func @_linear_der2_kernel(%arg0: i32, %arg1: memref<2x1024xf32, #tpu.memory_space<vmem>>, %arg2: memref<2x1024xf32, #tpu.memory_space<vmem>>) attributes {dimension_semantics = [#tpu.dimension_semantics<parallel>], iteration_bounds = array<i64: 1>, scalar_prefetch = 0 : i64, scratch_operands = 0 : i64, tpu.core_type = #tpu.core_type<tc>, window_params = [{transform_indices = @transform_0, window_bounds = array<i64: 2, 1024>}, {transform_indices = @transform_1, window_bounds = array<i64: 2, 1024>}]} {
    %c0 = arith.constant 0 : index
    %c0_0 = arith.constant 0 : index
    %0 = vector.load %arg1[%c0, %c0_0] : memref<2x1024xf32, #tpu.memory_space<vmem>>, vector<2x1024xf32>
    %cst = arith.constant 0.000000e+00 : f32
    %1 = vector.broadcast %cst : f32 to vector<2x1024xf32>
    %2 = arith.maximumf %0, %1 : vector<2x1024xf32>
    %cst_1 = arith.constant 0.000000e+00 : f32
    %3 = vector.broadcast %cst_1 : f32 to vector<2x1024xf32>
    %4 = arith.minimumf %2, %3 : vector<2x1024xf32>
    %c0_2 = arith.constant 0 : index
    %c0_3 = arith.constant 0 : index
    %5 = vector.load %arg2[%c0_2, %c0_3] : memref<2x1024xf32, #tpu.memory_space<vmem>>, vector<2x1024xf32>
    tpu.vector_store %arg2[%c0_2, %c0_3], %4 {strides = array<i32>} : memref<2x1024xf32, #tpu.memory_space<vmem>>, vector<2x1024xf32>,
    return
  }
  func.func @transform_0(%arg0: i32) -> (i32, i32) {
    %c0_i32 = arith.constant 0 : i32
    %c0_i32_0 = arith.constant 0 : i32
    return %arg0, %c0_i32 : i32, i32
  }
  func.func @transform_1(%arg0: i32) -> (i32, i32) {
    %c0_i32 = arith.constant 0 : i32
    %c0_i32_0 = arith.constant 0 : i32
    return %arg0, %c0_i32 : i32, i32
  }
}

</mosaic_0001>

<bundles_post_ra>
// kernel: tpu_custom_call.1
= control target key start
LH: loop header
LB: loop body
LE: loop exit
PB: predicated region body
PF: predicated region fallthrough
CT: control target
= control target key end

     0   :  { %6 = vsyncpa [#allocation3], 0  ;;  %s132_s0 = inlined_call_operand.hbm [shape: f32[2,1024], index: 0, kind: input, shape index: {}]   ;;  %s133_s1 = inlined_call_operand.hbm [shape: f32[2,1024], index: 1, kind: output, shape index: {}]  }
   0x1   :  { %7 = vsyncpa [#allocation4], 0  ;;  %s96_s6 = smov [#allocation2]   ;;  %s48_s10 = scalar_lea.hbm %s132_s0, 256 }
   0x2   :  { %s14_s7 = sshll.u32 %s96_s6, 4  ;;  %p49_p0 = scmp.ne.s32.totalorder %s132_s0, %s48_s10  ;;  %s15_s7 = int_to_ptr.vmem [resolvable:$true] %s14_s7 }
   0x3   :  { %p52_p1 = scmp.lt.u32.totalorder %s48_s10, %s132_s0 }
   0x5   :  { %p54_p2 = pnand %p52_p1, %p49_p0 }
   0x7   :  { %57 = shalt.err (!%p54_p2)
}
   0x8   :  { %s58_s15 = scalar_lea.vmem %s15_s7, 256  ;;  %p63_p4 = scmp.lt.s32.totalorder %s15_s7, %s15_s7 }
   0x9   :  { %p59_p3 = scmp.ne.s32.totalorder %s15_s7, %s58_s15  ;;  %p64_p5 = scmp.lt.s32.totalorder %s58_s15, %s58_s15 }
   0xb   :  { %p65_p6 = por %p64_p5, %p63_p4 }
   0xd   :  { %p66_p7 = pnand %p65_p6, %p59_p3 }
   0xf   :  { %69 = shalt.err (!%p66_p7)
}
  0x10   :  { %17 = dma.hbm_to_vmem [thread:$0]  %s132_s0, 256, %s15_s7, [#allocation3]  }
  0x11   :  { %92 = dma.done.wait [#allocation3], 256  }
  0x12   :  { %93 = vsyncadd [#allocation3], 4294967040  ;;  %s97_s18 = smov [#allocation5]   ;;  %v21_v0 = vld [vmem:[#allocation2] sm:$0xff]  ;;  %v22_v1 = vld [vmem:[#allocation2 + $0x8] sm:$0xff] }
  0x13   :  { %s35_s19 = sshll.u32 %s97_s18, 4  ;;  %v44_v2 = vclamps-f32 %v21_v0, 0.0  ;;  %v45_v3 = vclamps-f32 %v22_v1, 0.0  ;;  %s36_s19 = int_to_ptr.vmem [resolvable:$true] %s35_s19 }
  0x14   :  { %s70_s20 = scalar_lea.vmem %s36_s19, 256  ;;  %p75_p9 = scmp.lt.s32.totalorder %s36_s19, %s36_s19 }
  0x15   :  { %27 = vst [vmem:[#allocation5] sm:$0xff] %v44_v2  ;;  %28 = vst [vmem:[#allocation5 + $0x8] sm:$0xff] %v45_v3  ;;  %p71_p8 = scmp.ne.s32.totalorder %s36_s19, %s70_s20  ;;  %p76_p10 = scmp.lt.s32.totalorder %s70_s20, %s70_s20 }
  0x17   :  { %p77_p11 = por %p76_p10, %p75_p9 }
  0x19   :  { %p78_p12 = pnand %p77_p11, %p71_p8 }
  0x1b   :  { %81 = shalt.err (!%p78_p12)
}
  0x1c   :  { %s82_s22 = scalar_lea.hbm %s133_s1, 256 }
  0x1d   :  { %p83_p13 = scmp.ne.s32.totalorder %s133_s1, %s82_s22  ;;  %p86_p0 = scmp.lt.u32.totalorder %s82_s22, %s133_s1 }
  0x1f   :  { %p88_p1 = pnand %p86_p0, %p83_p13 }
  0x21   :  { %91 = shalt.err (!%p88_p1)
}
  0x22   :  { %38 = dma.vmem_to_hbm [thread:$0]  %s36_s19, 256, %s133_s1, [#allocation4]  }
  0x23   :  { %94 = dma.done.wait [#allocation4], 256  }
  0x24   :  { %95 = vsyncadd [#allocation4], 4294967040 }
  0x25   :  { %42 = vsyncpa [#allocation3], 1 }
  0x26   :  { %43 = vsyncpa [#allocation4], 1 }

</bundles_post_ra>
